<compile_context>
chip_gen: v6e
topology: v6e:2x2x1
jax: 0.10.0
libtpu: 0.0.40
codegen_flags: <defaults>
</compile_context>

<pallas_src>
import jax
import jax.numpy as jnp
from jax import lax
from jax.experimental import pallas as pl
from jax.experimental.pallas import tpu as pltpu


def _round_up(x: int, mult: int) -> int:
    return ((x + mult - 1) // mult) * mult


def _sublane_multiple(dtype) -> int:
    # f32 -> 8 rows per sublane tile, bf16 -> 16, int8/fp8 -> 32.
    itemsize = jnp.dtype(dtype).itemsize
    return max(8, 8 * (4 // max(itemsize, 1)))


def _hw_vmem_budget_bytes() -> int:
    """Physical VMEM per TensorCore with ~25% headroom for Mosaic scratch.

    ~48 MiB usable on v7x (64 MiB physical), ~96 MiB on v5e/v6e (128 MiB).
    Falls back to a conservative 48 MiB when the query is unavailable.
    """
    try:
        cap = int(pltpu.get_tpu_info().vmem_capacity_bytes)
    except Exception:
        cap = 64 << 20
    return (cap * 3) // 4


def _loc_kernel(x_ref, w_ref, b_ref, loc_ref):
    # x_ref: (tm, K), w_ref: (E, K) (PyTorch Linear layout), b_ref: (1, E).
    loc = lax.dot_general(
        x_ref[...], w_ref[...],
        dimension_numbers=(((1,), (1,)), ((), ())),   # contract last dims: x @ W^T
        preferred_element_type=jnp.float32)
    loc = loc + b_ref[...].astype(jnp.float32)
    loc_ref[...] = loc.astype(loc_ref.dtype)


def _loc_kernel_ktiled(x_ref, w_ref, b_ref, loc_ref, acc_ref):
    # Grid: (row tiles [parallel], K tiles [arbitrary]).
    k = pl.program_id(1)

    @pl.when(k == 0)
    def _():
        # Init the accumulator with the broadcast bias (no separate epilogue add).
        acc_ref[...] = jnp.broadcast_to(b_ref[...].astype(jnp.float32),
                                        acc_ref.shape)

    acc_ref[...] += lax.dot_general(
        x_ref[...], w_ref[...],
        dimension_numbers=(((1,), (1,)), ((), ())),
        preferred_element_type=jnp.float32)

    @pl.when(k == pl.num_programs(1) - 1)
    def _():
        loc_ref[...] = acc_ref[...].astype(loc_ref.dtype)


def normal_fixed_scale_params(inputs: jax.Array,
                              weight: jax.Array,
                              bias: jax.Array,
                              scale: float = 1.0,
                              *,
                              tm_target: int = 1024,
                              vmem_budget_bytes: int | None = None):
    """Pallas implementation of NormalFixedScaleParams.forward.

    inputs: (..., in_features)
    weight: (event_size, in_features)   -- PyTorch nn.Linear layout (NOT transposed)
    bias:   (event_size,)
    Returns {'loc': (..., event_size), 'scale': (..., event_size)}.
    """
    E, K = weight.shape
    assert inputs.shape[-1] == K
    assert bias.shape == (E,)

    lead_shape = inputs.shape[:-1]
    m = 1
    for d in lead_shape:
        m *= d
    x2d = inputs.reshape(m, K)
    b2d = bias.reshape(1, E)

    x_bytes = jnp.dtype(x2d.dtype).itemsize
    w_bytes = jnp.dtype(weight.dtype).itemsize
    out_bytes = x_bytes                      # output uses the input dtype
    sub = _sublane_multiple(x2d.dtype)       # 8 for f32, 16 for bf16, 32 for int8
    out_w_pad = _round_up(max(E, 1), 128)    # VMEM lane-pads output blocks to 128

    hw_budget = _hw_vmem_budget_bytes()
    budget = vmem_budget_bytes if vmem_budget_bytes is not None else hw_budget
    # Raising the scoped limit never hurts; never exceed the hw-derived budget.
    vmem_limit = int(min(max(budget, 32 << 20), hw_budget))

    def _max_rows(tk_, k_tiled_):
        # Resident (double-buffered) weight + a little slack for bias/metadata.
        fixed = 2 * E * tk_ * w_bytes + (64 << 10)
        # Per-row: double-buffered x window + double-buffered output window
        # (+ f32 accumulator scratch when K is tiled).
        per_row = 2 * tk_ * x_bytes + 2 * out_w_pad * out_bytes
        if k_tiled_:
            per_row += out_w_pad * 4
        avail = budget - fixed
        return 0 if avail <= 0 else avail // per_row

    # --- choose K tiling --------------------------------------------------
    tk = K
    k_tiled = False
    rows = _max_rows(K, False)
    if rows < 512 and K > 128:
        best_tk, best_rows = None, -1
        for cand in (4096, 2048, 1024, 512, 256, 128):
            if cand < K and K % cand == 0:          # exact divisor: no ragged K block
                r = _max_rows(cand, True)
                if r >= 512:
                    best_tk, best_rows = cand, r
                    break
                if r > best_rows:
                    best_tk, best_rows = cand, r
        if best_tk is not None and best_rows > rows:
            tk, rows, k_tiled = best_tk, best_rows, True

    # --- choose the row tile ----------------------------------------------
    tm_eff = min(_round_up(tm_target, sub), _round_up(max(m, 1), sub))
    if rows >= sub:
        tm_eff = min(tm_eff, (rows // sub) * sub)
    else:
        tm_eff = sub            # below budget; rely on the 25% headroom
    # v7x megacore: once the problem is big enough that each half still holds a
    # >=512-row tile, make sure the "parallel" row axis has at least 2 steps.
    if m >= 1024:
        tm_eff = min(tm_eff, _round_up(-(-m // 2), sub))
    tm_eff = max(tm_eff, sub)

    num_m = pl.cdiv(m, tm_eff)

    # --- specs / grid -------------------------------------------------------
    if k_tiled:
        nk = K // tk
        grid = (num_m, nk)
        in_specs = [
            pl.BlockSpec((tm_eff, tk), lambda i, k: (i, k)),
            pl.BlockSpec((E, tk), lambda i, k: (0, k)),
            pl.BlockSpec((1, E), lambda i, k: (0, 0)),
        ]
        out_specs = pl.BlockSpec((tm_eff, E), lambda i, k: (i, 0))
        scratch_shapes = (pltpu.VMEM((tm_eff, E), jnp.float32),)
        kernel = _loc_kernel_ktiled
        dim_sem = ("parallel", "arbitrary")
        w_hbm_reads = num_m
    else:
        grid = (num_m,)
        in_specs = [
            pl.BlockSpec((tm_eff, K), lambda i: (i, 0)),
            pl.BlockSpec((E, K), lambda i: (0, 0)),
            pl.BlockSpec((1, E), lambda i: (0, 0)),
        ]
        out_specs = pl.BlockSpec((tm_eff, E), lambda i: (i, 0))
        scratch_shapes = ()
        kernel = _loc_kernel
        dim_sem = ("parallel",)
        w_hbm_reads = 1

    cost = pl.CostEstimate(
        flops=2 * m * K * E,
        transcendentals=0,
        bytes_accessed=(m * K * x_bytes
                        + w_hbm_reads * K * E * w_bytes
                        + E * jnp.dtype(bias.dtype).itemsize
                        + m * E * out_bytes),
    )

    loc2d = pl.pallas_call(
        kernel,
        out_shape=jax.ShapeDtypeStruct((m, E), inputs.dtype),
        grid_spec=pltpu.PrefetchScalarGridSpec(
            num_scalar_prefetch=0,
            grid=grid,
            in_specs=in_specs,
            out_specs=out_specs,
            scratch_shapes=scratch_shapes,
        ),
        compiler_params=pltpu.CompilerParams(
            dimension_semantics=dim_sem,
            vmem_limit_bytes=vmem_limit,
        ),
        cost_estimate=cost,
    )(x2d, weight, b2d)

    loc = loc2d.reshape(*lead_shape, E)
    # Constant scale tensor produced outside the kernel (XLA constant-folds /
    # fuses it with the consumer).
    scale_out = jnp.full(lead_shape + (E,), scale, dtype=inputs.dtype)
    return {"loc": loc, "scale": scale_out}


if __name__ == "__main__":
    key = jax.random.PRNGKey(0)
    k_x, k_w, k_b, k_x2, k_w2, k_b2 = jax.random.split(key, 6)

    # --- case 1: module-like small shapes (batch=2, seq=8, hidden=32 -> E=16)
    in_features, event_size, scale_const = 32, 16, 0.5
    x = jax.random.normal(k_x, (2, 8, in_features), dtype=jnp.float32)
    bound = 1.0 / (in_features ** 0.5)     # deterministic nn.Linear-style init
    weight = jax.random.uniform(k_w, (event_size, in_features),
                                minval=-bound, maxval=bound, dtype=jnp.float32)
    bias = jax.random.uniform(k_b, (event_size,),
                              minval=-bound, maxval=bound, dtype=jnp.float32)

    out = normal_fixed_scale_params(x, weight, bias, scale=scale_const)
    jax.block_until_ready(out)

    loc_ref = x @ weight.T + bias
    scale_ref = jnp.full(x.shape[:-1] + (event_size,), scale_const, dtype=x.dtype)
    assert out["loc"].shape == loc_ref.shape
    assert out["scale"].shape == scale_ref.shape
    assert jnp.allclose(out["loc"], loc_ref, atol=1e-5, rtol=1e-5)
    assert jnp.allclose(out["scale"], scale_ref)

    # --- case 2: exercise the K-tiled (reduction-axis) path by giving the
    # tiling heuristic an artificially small VMEM budget.
    in2, ev2 = 256, 16
    x2 = jax.random.normal(k_x2, (4, 16, in2), dtype=jnp.float32)
    bound2 = 1.0 / (in2 ** 0.5)
    w2 = jax.random.uniform(k_w2, (ev2, in2),
                            minval=-bound2, maxval=bound2, dtype=jnp.float32)
    b2 = jax.random.uniform(k_b2, (ev2,),
                            minval=-bound2, maxval=bound2, dtype=jnp.float32)

    out2 = normal_fixed_scale_params(x2, w2, b2, scale=1.0,
                                     vmem_budget_bytes=1 << 20)
    jax.block_until_ready(out2)
    loc2_ref = x2 @ w2.T + b2
    assert out2["loc"].shape == loc2_ref.shape
    assert jnp.allclose(out2["loc"], loc2_ref, atol=1e-3, rtol=1e-3)

    print("KERNEL_OK")
</pallas_src>

<mosaic_0001>
module attributes {stable_mosaic.version = 11 : i64} {
  func.func @_loc_kernel(%arg0: i32, %arg1: memref<16x32xf32, #tpu.memory_space<vmem>>, %arg2: memref<16x32xf32, #tpu.memory_space<vmem>>, %arg3: memref<1x16xf32, #tpu.memory_space<vmem>>, %arg4: memref<16x16xf32, #tpu.memory_space<vmem>>) attributes {dimension_semantics = [#tpu.dimension_semantics<parallel>], iteration_bounds = array<i64: 1>, scalar_prefetch = 0 : i64, scratch_operands = 0 : i64, tpu.core_type = #tpu.core_type<tc>, window_params = [{transform_indices = @transform_0, window_bounds = array<i64: 16, 32>}, {pipeline_mode = #tpu.pipeline_mode<synchronous>, transform_indices = @transform_1, window_bounds = array<i64: 16, 32>}, {pipeline_mode = #tpu.pipeline_mode<synchronous>, transform_indices = @transform_2, window_bounds = array<i64: 1, 16>}, {transform_indices = @transform_3, window_bounds = array<i64: 16, 16>}]} {
    %c0 = arith.constant 0 : index
    %c0_0 = arith.constant 0 : index
    %0 = vector.load %arg1[%c0, %c0_0] : memref<16x32xf32, #tpu.memory_space<vmem>>, vector<16x32xf32>
    %c0_1 = arith.constant 0 : index
    %c0_2 = arith.constant 0 : index
    %1 = vector.load %arg2[%c0_1, %c0_2] : memref<16x32xf32, #tpu.memory_space<vmem>>, vector<16x32xf32>
    %cst = arith.constant dense<0.000000e+00> : vector<16x16xf32>
    %2 = tpu.matmul %0, %1, %cst {dimension_numbers = #tpu.dot_dimension_numbers<[1], [1], [0], [0], [0, 0, 1, 0], [], []>} : vector<16x32xf32>, vector<16x32xf32>, vector<16x16xf32> -> vector<16x16xf32>
    %c0_3 = arith.constant 0 : index
    %c0_4 = arith.constant 0 : index
    %3 = vector.load %arg3[%c0_3, %c0_4] : memref<1x16xf32, #tpu.memory_space<vmem>>, vector<1x16xf32>
    %4 = vector.broadcast %3 : vector<1x16xf32> to vector<16x16xf32>
    %5 = arith.addf %2, %4 : vector<16x16xf32>
    %c0_5 = arith.constant 0 : index
    %c0_6 = arith.constant 0 : index
    %6 = vector.load %arg4[%c0_5, %c0_6] : memref<16x16xf32, #tpu.memory_space<vmem>>, vector<16x16xf32>
    tpu.vector_store %arg4[%c0_5, %c0_6], %5 {strides = array<i32>} : memref<16x16xf32, #tpu.memory_space<vmem>>, vector<16x16xf32>,
    return
  }
  func.func @transform_0(%arg0: i32) -> (i32, i32) {
    %c0_i32 = arith.constant 0 : i32
    %c0_i32_0 = arith.constant 0 : i32
    return %arg0, %c0_i32 : i32, i32
  }
  func.func @transform_1(%arg0: i32) -> (i32, i32) {
    %c0_i32 = arith.constant 0 : i32
    %c0_i32_0 = arith.constant 0 : i32
    %c0_i32_1 = arith.constant 0 : i32
    return %c0_i32, %c0_i32_0 : i32, i32
  }
  func.func @transform_2(%arg0: i32) -> (i32, i32) {
    %c0_i32 = arith.constant 0 : i32
    %c0_i32_0 = arith.constant 0 : i32
    %c0_i32_1 = arith.constant 0 : i32
    return %c0_i32, %c0_i32_0 : i32, i32
  }
  func.func @transform_3(%arg0: i32) -> (i32, i32) {
    %c0_i32 = arith.constant 0 : i32
    %c0_i32_0 = arith.constant 0 : i32
    return %arg0, %c0_i32 : i32, i32
  }
}

</mosaic_0001>

<bundles_post_ra>
// kernel: tpu_custom_call.1
= control target key start
LH: loop header
LB: loop body
LE: loop exit
PB: predicated region body
PF: predicated region fallthrough
CT: control target
= control target key end

     0   :  { %8 = vsyncpa [#allocation3], 0  ;;  %s296_s0 = inlined_call_operand.hbm [shape: f32[16,32], index: 0, kind: input, shape index: {}]   ;;  %s297_s1 = inlined_call_operand.hbm [shape: f32[16,32], index: 1, kind: input, shape index: {}]   ;;  %s298_s2 = inlined_call_operand.vmem [shape: f32[1,16], index: 2, kind: input, shape index: {}]   ;;  %s299_s3 = inlined_call_operand.hbm [shape: f32[16,16], index: 3, kind: output, shape index: {}]  }
   0x1   :  { %9 = vsyncpa [#allocation6], 0 }
   0x2   :  { %10 = vsyncpa [#allocation4], 0  ;;  %s250_s12 = smov [#allocation2]  }
   0x3   :  { %s16_s13 = sshll.u32 %s250_s12, 4  ;;  %s17_s13 = int_to_ptr.vmem [resolvable:$true] %s16_s13 }
   0x4   :  { %s192_s14 = scalar_lea.vmem %s17_s13, 256  ;;  %p197_p1 = scmp.lt.s32.totalorder %s17_s13, %s17_s13 }
   0x5   :  { %p193_p0 = scmp.ne.s32.totalorder %s17_s13, %s192_s14  ;;  %p198_p2 = scmp.lt.s32.totalorder %s192_s14, %s192_s14 }
   0x7   :  { %p199_p3 = por %p198_p2, %p197_p1 }
   0x9   :  { %p200_p4 = pnand %p199_p3, %p193_p0 }
   0xb   :  { %203 = shalt.err (!%p200_p4)
}
   0xc   :  { %s251_s15 = smov 128   ;;  %s252_s16 = smov 8  }
   0xd   :  { %22 = dma.hbm_to_vmem [thread:$0]  %s296_s0, 256, %s17_s13, [#allocation3], %s251_s15, %s251_s15, %s252_s16  }
   0xe   :  { %s253_s19 = smov [#allocation5]  }
   0xf   :  { %s28_s20 = sshll.u32 %s253_s19, 4  ;;  %s29_s20 = int_to_ptr.vmem [resolvable:$true] %s28_s20 }
  0x10   :  { %s212_s21 = scalar_lea.vmem %s29_s20, 256  ;;  %p217_p6 = scmp.lt.s32.totalorder %s29_s20, %s29_s20 }
  0x11   :  { %p213_p5 = scmp.ne.s32.totalorder %s29_s20, %s212_s21  ;;  %p218_p7 = scmp.lt.s32.totalorder %s212_s21, %s212_s21 }
  0x13   :  { %p219_p8 = por %p218_p7, %p217_p6 }
  0x15   :  { %p220_p9 = pnand %p219_p8, %p213_p5 }
  0x17   :  { %223 = shalt.err (!%p220_p9)
}
  0x18   :  { %34 = dma.hbm_to_vmem [thread:$0]  %s297_s1, 256, %s29_s20, [#allocation6], %s251_s15, %s251_s15, %s252_s16  }
  0x19   :  { %244 = dma.done.wait [#allocation3], 256  }
  0x1a   :  { %245 = vsyncadd [#allocation3], 4294967040 }
  0x1b   :  { %246 = dma.done.wait [#allocation6], 256  }
  0x1c   :  { %247 = vsyncadd [#allocation6], 4294967040  ;;  %vm54_vm0 = vcmask 261120   ;;  %v46_v0 = vld [vmem:[#allocation5 + $0x8] sm:$0xff]  ;;  %v45_v1 = vld [vmem:[#allocation5] sm:$0xff]  ;;  %vm142_vm1 = vcmask 130048  }
  0x1d   :  { %v43_v2 = vld [vmem:[#allocation2] sm:$0xff]  ;;  %172 = vmatprep.subr.msk.mxu0 %vm54_vm0, %v46_v0  ;;  %v44_v3 = vld [vmem:[#allocation2 + $0x8] sm:$0xff]  ;;  %s254_s1 = smov [#allocation7]  }
  0x1e   :  { %176 = vmatprep.mubr.msk.f32.mxu0 %vm54_vm0, %v43_v2  ;;  %173 = vmatpush3.xpose.msk.msra.mxu0 %vm54_vm0, %v46_v0  ;;  %v163_v4 = vld [vmem:[%s298_s2] ss:$0 sm:$0xff]  ;;  %s150_s25 = sshll.u32 %s254_s1, 4  ;;  %s151_s25 = int_to_ptr.vmem [resolvable:$true] %s150_s25 }
  0x1f   :  { %174 = vmatprep.subr.msk.mxu0 %vm54_vm0, %v45_v1  ;;  %s224_s26 = scalar_lea.vmem %s151_s25, 256  ;;  %p229_p11 = scmp.lt.s32.totalorder %s151_s25, %s151_s25 }
  0x20   :  { %p225_p10 = scmp.ne.s32.totalorder %s151_s25, %s224_s26  ;;  %p230_p12 = scmp.lt.s32.totalorder %s224_s26, %s224_s26 }
  0x22   :  { %175 = vmatpush3.xpose.msk.msra.mxu0 %vm54_vm0, %v45_v1  ;;  %p231_p13 = por %p230_p12, %p229_p11 }
  0x24   :  { %p232_p0 = pnand %p231_p13, %p225_p10 }
  0x25   :  { %177 = vmatmul.mubr.msk.f32.vlgmr.msra.gmra.mxu0 %vm54_vm0, %v44_v3 }
  0xe5   :  { %v178_v5 = vpop.f32.mrf.mxu0 }
  0xe6   :  { %v139_v6 = vadd.f32 %v178_v5, %v163_v4 }
  0xe7   :  { %v133_v7 = vpop.f32.mrf.mxu0 }
  0xe8   :  { %v134_v8 = vadd.f32 %v163_v4, %v133_v7  ;;  %144 = vst.msk [vmem:[#allocation7 + $0x8] sm:$0xff] %vm142_vm1, %v139_v6 }
  0xea   :  { %143 = vst.msk [vmem:[#allocation7] sm:$0xff] %vm142_vm1, %v134_v8 }
  0xeb   :  { %235 = shalt.err (!%p232_p0)
}
  0xec   :  { %156 = dma.vmem_to_hbm [thread:$0]  %s151_s25, 256, %s299_s3, [#allocation4], %s251_s15, %s251_s15, %s252_s16  }
  0xed   :  { %248 = dma.done.wait [#allocation4], 256  }
  0xee   :  { %249 = vsyncadd [#allocation4], 4294967040 }
  0xef   :  { %160 = vsyncpa [#allocation3], 1 }
  0xf0   :  { %161 = vsyncpa [#allocation6], 1 }
  0xf1   :  { %162 = vsyncpa [#allocation4], 1 }

</bundles_post_ra>
